<compile_context>
chip_gen: v6e
topology: v6e:2x2x1
jax: 0.10.0
libtpu: 0.0.40
codegen_flags: <defaults>
</compile_context>

<pallas_src>
import jax
import jax.numpy as jnp
from jax.experimental import pallas as pl
from jax.experimental.pallas import tpu as pltpu

HIDDEN_SIZE = 256
IMAGE_SIZE = 32
NOISE_DIM = 100
NUM_CLASS = 10
IN_DIM = NOISE_DIM + NUM_CLASS          # 110
IN_PAD = 128                            # lane-aligned K for layer 1
OUT_DIM = IMAGE_SIZE * IMAGE_SIZE       # 1024


def _round_up(n, m):
    return ((n + m - 1) // m) * m


def _tensorcores_per_chip():
    """Best-effort TensorCore-per-chip count (v7x / megacore => 2+)."""
    try:
        dev = jax.devices()[0]
    except Exception:
        return 1
    n = 1
    try:
        n = max(n, int(getattr(dev, "num_cores", 1)))
    except Exception:
        pass
    try:
        if "v7" in str(getattr(dev, "device_kind", "")).lower():
            n = max(n, 2)
    except Exception:
        pass
    return n


def _default_tm(B):
    # Big tiles amortize per-grid-step overhead (~0.35 us); cap so chips with
    # >1 TensorCore still get >= num_cores steps on the "parallel" batch axis.
    # Sweep tm in [256, 1024] for a specific chip / batch size if needed.
    tm = min(512, _round_up(B, 8))
    cores = _tensorcores_per_chip()
    if cores > 1:
        tm = min(tm, max(8, _round_up(pl.cdiv(B, cores), 8)))
    return tm


def _generator_kernel(x_ref, w1_ref, b1_ref, w2_ref, b2_ref, w3_ref, b3_ref,
                      o_ref):
    # Fused MLP on one batch tile: bf16 MXU matmuls, f32 accumulate/elementwise.
    x = x_ref[...]                                            # bf16 [tm, 128]

    # Layer 1: Linear(128(pad of 110) -> 256) + ReLU
    h1 = jnp.dot(x, w1_ref[...], preferred_element_type=jnp.float32)
    h1 = jnp.maximum(h1 + b1_ref[...], 0.0)                   # f32

    # Layer 2: Linear(256 -> 256) + ReLU
    h2 = jnp.dot(h1.astype(jnp.bfloat16), w2_ref[...],
                 preferred_element_type=jnp.float32)
    h2 = jnp.maximum(h2 + b2_ref[...], 0.0)                   # f32

    # Layer 3: Linear(256 -> 1024) + Tanh, store in output dtype (default bf16)
    h3 = jnp.dot(h2.astype(jnp.bfloat16), w3_ref[...],
                 preferred_element_type=jnp.float32)
    o_ref[...] = jnp.tanh(h3 + b3_ref[...]).astype(o_ref.dtype)


def generator_forward(x, params, *, tm=None, out_dtype=jnp.bfloat16):
    """x: [B, 110] float32.  Returns [B, 1024] `out_dtype` (tanh activated)."""
    w1, b1, w2, b2, w3, b3 = params
    B, F = x.shape
    assert F == IN_DIM, F

    if tm is None:
        tm = _default_tm(B)
    grid = (pl.cdiv(B, tm),)

    # Lane-align K (110 -> 128) + cast to bf16.  One tiny pad/convert that XLA
    # fuses with x's producer under jit; the padded lanes are explicit zeros,
    # matching the zero rows appended to w1.
    xp = jnp.pad(x.astype(jnp.bfloat16), ((0, 0), (0, IN_PAD - IN_DIM)))

    resident = lambda shape: pl.BlockSpec(shape, lambda i: (0, 0))

    flops = 2 * B * (IN_PAD * HIDDEN_SIZE
                     + HIDDEN_SIZE * HIDDEN_SIZE
                     + HIDDEN_SIZE * OUT_DIM)
    bytes_accessed = (B * IN_PAD * 2
                      + B * OUT_DIM * jnp.dtype(out_dtype).itemsize
                      + (w1.size + w2.size + w3.size) * 2
                      + (b1.size + b2.size + b3.size) * 4)

    out = pl.pallas_call(
        _generator_kernel,
        out_shape=jax.ShapeDtypeStruct((B, OUT_DIM), out_dtype),
        grid=grid,
        in_specs=[
            pl.BlockSpec((tm, IN_PAD), lambda i: (i, 0)),
            resident((IN_PAD, HIDDEN_SIZE)), resident((1, HIDDEN_SIZE)),
            resident((HIDDEN_SIZE, HIDDEN_SIZE)), resident((1, HIDDEN_SIZE)),
            resident((HIDDEN_SIZE, OUT_DIM)), resident((1, OUT_DIM)),
        ],
        out_specs=pl.BlockSpec((tm, OUT_DIM), lambda i: (i, 0)),
        compiler_params=pltpu.CompilerParams(
            dimension_semantics=("parallel",),
            vmem_limit_bytes=32 << 20),
        cost_estimate=pl.CostEstimate(
            flops=flops,
            transcendentals=B * OUT_DIM,
            bytes_accessed=bytes_accessed),
    )(xp, w1, b1, w2, b2, w3, b3)

    return out


def init_params(key):
    """PyTorch-style uniform(-1/sqrt(fan_in), 1/sqrt(fan_in)) init.

    Weights are stored [in_features, out_features] in bfloat16 (w1 zero-padded
    to 128 input rows); biases stay float32 with shape (1, out_features)."""
    def linear(key, fan_in, fan_out, pad_in=None):
        kw, kb = jax.random.split(key)
        bound = 1.0 / jnp.sqrt(jnp.float32(fan_in))
        w = jax.random.uniform(kw, (fan_in, fan_out), jnp.float32, -bound, bound)
        b = jax.random.uniform(kb, (1, fan_out), jnp.float32, -bound, bound)
        if pad_in is not None and pad_in > fan_in:
            w = jnp.zeros((pad_in, fan_out), jnp.float32).at[:fan_in].set(w)
        return w.astype(jnp.bfloat16), b

    k1, k2, k3 = jax.random.split(key, 3)
    w1, b1 = linear(k1, IN_DIM, HIDDEN_SIZE, pad_in=IN_PAD)
    w2, b2 = linear(k2, HIDDEN_SIZE, HIDDEN_SIZE)
    w3, b3 = linear(k3, HIDDEN_SIZE, OUT_DIM)
    return (w1, b1, w2, b2, w3, b3)


def reference_forward(x, params):
    """Plain-JAX reference using the same bf16 weights / f32 accumulation."""
    w1, b1, w2, b2, w3, b3 = params
    xp = jnp.pad(x.astype(jnp.bfloat16), ((0, 0), (0, IN_PAD - IN_DIM)))
    h = jnp.dot(xp, w1, preferred_element_type=jnp.float32) + b1
    h = jnp.maximum(h, 0.0)
    h = jnp.dot(h.astype(jnp.bfloat16), w2, preferred_element_type=jnp.float32) + b2
    h = jnp.maximum(h, 0.0)
    h = jnp.dot(h.astype(jnp.bfloat16), w3, preferred_element_type=jnp.float32) + b3
    return jnp.tanh(h)   # f32


if __name__ == "__main__":
    key = jax.random.PRNGKey(0)
    k_params, k_noise, k_label = jax.random.split(key, 3)

    params = init_params(k_params)

    # Small batch; input = concat(noise[100], one-hot class label[10]) -> [B, 110]
    B = 8
    noise = jax.random.normal(k_noise, (B, NOISE_DIM), jnp.float32)
    labels = jax.random.randint(k_label, (B,), 0, NUM_CLASS)
    one_hot = jax.nn.one_hot(labels, NUM_CLASS, dtype=jnp.float32)
    x = jnp.concatenate([noise, one_hot], axis=1)   # [8, 110]

    forward = jax.jit(generator_forward)
    out = jax.block_until_ready(forward(x, params))

    # Sanity check against a plain-JAX reference using identical bf16 weights.
    # Tolerance reflects the bf16 output store (tanh outputs are in [-1, 1]).
    ref = jax.block_until_ready(reference_forward(x, params))
    assert out.shape == (B, OUT_DIM), out.shape
    assert out.dtype == jnp.bfloat16, out.dtype
    err = float(jnp.max(jnp.abs(out.astype(jnp.float32) - ref)))
    assert err < 2.5e-2, err

    print("KERNEL_OK")
</pallas_src>

<mosaic_0001>
module attributes {stable_mosaic.version = 11 : i64} {
  func.func @_generator_kernel(%arg0: i32, %arg1: memref<8x128xbf16, #tpu.memory_space<vmem>>, %arg2: memref<128x256xbf16, #tpu.memory_space<vmem>>, %arg3: memref<1x256xf32, #tpu.memory_space<vmem>>, %arg4: memref<256x256xbf16, #tpu.memory_space<vmem>>, %arg5: memref<1x256xf32, #tpu.memory_space<vmem>>, %arg6: memref<256x1024xbf16, #tpu.memory_space<vmem>>, %arg7: memref<1x1024xf32, #tpu.memory_space<vmem>>, %arg8: memref<8x1024xbf16, #tpu.memory_space<vmem>>) attributes {dimension_semantics = [#tpu.dimension_semantics<parallel>], iteration_bounds = array<i64: 1>, scalar_prefetch = 0 : i64, scratch_operands = 0 : i64, tpu.core_type = #tpu.core_type<tc>, window_params = [{transform_indices = @transform_0, window_bounds = array<i64: 8, 128>}, {pipeline_mode = #tpu.pipeline_mode<synchronous>, transform_indices = @transform_1, window_bounds = array<i64: 128, 256>}, {pipeline_mode = #tpu.pipeline_mode<synchronous>, transform_indices = @transform_2, window_bounds = array<i64: 1, 256>}, {pipeline_mode = #tpu.pipeline_mode<synchronous>, transform_indices = @transform_3, window_bounds = array<i64: 256, 256>}, {pipeline_mode = #tpu.pipeline_mode<synchronous>, transform_indices = @transform_4, window_bounds = array<i64: 1, 256>}, {pipeline_mode = #tpu.pipeline_mode<synchronous>, transform_indices = @transform_5, window_bounds = array<i64: 256, 1024>}, {pipeline_mode = #tpu.pipeline_mode<synchronous>, transform_indices = @transform_6, window_bounds = array<i64: 1, 1024>}, {transform_indices = @transform_7, window_bounds = array<i64: 8, 1024>}]} {
    %c0 = arith.constant 0 : index
    %c0_0 = arith.constant 0 : index
    %0 = vector.load %arg1[%c0, %c0_0] : memref<8x128xbf16, #tpu.memory_space<vmem>>, vector<8x128xbf16>
    %c0_1 = arith.constant 0 : index
    %c0_2 = arith.constant 0 : index
    %1 = vector.load %arg2[%c0_1, %c0_2] : memref<128x256xbf16, #tpu.memory_space<vmem>>, vector<128x256xbf16>
    %cst = arith.constant dense<0.000000e+00> : vector<8x256xf32>
    %2 = tpu.matmul %0, %1, %cst {dimension_numbers = #tpu.dot_dimension_numbers<[1], [0], [0], [1], [0, 0, 1, 1], [], []>} : vector<8x128xbf16>, vector<128x256xbf16>, vector<8x256xf32> -> vector<8x256xf32>
    %c0_3 = arith.constant 0 : index
    %c0_4 = arith.constant 0 : index
    %3 = vector.load %arg3[%c0_3, %c0_4] : memref<1x256xf32, #tpu.memory_space<vmem>>, vector<1x256xf32>
    %4 = vector.broadcast %3 : vector<1x256xf32> to vector<8x256xf32>
    %5 = arith.addf %2, %4 : vector<8x256xf32>
    %cst_5 = arith.constant 0.000000e+00 : f32
    %6 = vector.broadcast %cst_5 : f32 to vector<8x256xf32>
    %7 = arith.maximumf %5, %6 : vector<8x256xf32>
    %8 = arith.truncf %7 : vector<8x256xf32> to vector<8x256xbf16>
    %c0_6 = arith.constant 0 : index
    %c0_7 = arith.constant 0 : index
    %9 = vector.load %arg4[%c0_6, %c0_7] : memref<256x256xbf16, #tpu.memory_space<vmem>>, vector<256x256xbf16>
    %cst_8 = arith.constant dense<0.000000e+00> : vector<8x256xf32>
    %10 = tpu.matmul %8, %9, %cst_8 {dimension_numbers = #tpu.dot_dimension_numbers<[1], [0], [0], [1], [0, 0, 1, 1], [], []>} : vector<8x256xbf16>, vector<256x256xbf16>, vector<8x256xf32> -> vector<8x256xf32>
    %c0_9 = arith.constant 0 : index
    %c0_10 = arith.constant 0 : index
    %11 = vector.load %arg5[%c0_9, %c0_10] : memref<1x256xf32, #tpu.memory_space<vmem>>, vector<1x256xf32>
    %12 = vector.broadcast %11 : vector<1x256xf32> to vector<8x256xf32>
    %13 = arith.addf %10, %12 : vector<8x256xf32>
    %cst_11 = arith.constant 0.000000e+00 : f32
    %14 = vector.broadcast %cst_11 : f32 to vector<8x256xf32>
    %15 = arith.maximumf %13, %14 : vector<8x256xf32>
    %16 = arith.truncf %15 : vector<8x256xf32> to vector<8x256xbf16>
    %c0_12 = arith.constant 0 : index
    %c0_13 = arith.constant 0 : index
    %17 = vector.load %arg6[%c0_12, %c0_13] : memref<256x1024xbf16, #tpu.memory_space<vmem>>, vector<256x1024xbf16>
    %cst_14 = arith.constant dense<0.000000e+00> : vector<8x1024xf32>
    %18 = tpu.matmul %16, %17, %cst_14 {dimension_numbers = #tpu.dot_dimension_numbers<[1], [0], [0], [1], [0, 0, 1, 1], [], []>} : vector<8x256xbf16>, vector<256x1024xbf16>, vector<8x1024xf32> -> vector<8x1024xf32>
    %c0_15 = arith.constant 0 : index
    %c0_16 = arith.constant 0 : index
    %19 = vector.load %arg7[%c0_15, %c0_16] : memref<1x1024xf32, #tpu.memory_space<vmem>>, vector<1x1024xf32>
    %20 = vector.broadcast %19 : vector<1x1024xf32> to vector<8x1024xf32>
    %21 = arith.addf %18, %20 : vector<8x1024xf32>
    %22 = math.tanh %21 : vector<8x1024xf32>
    %23 = arith.truncf %22 : vector<8x1024xf32> to vector<8x1024xbf16>
    %c0_17 = arith.constant 0 : index
    %c0_18 = arith.constant 0 : index
    %24 = vector.load %arg8[%c0_17, %c0_18] : memref<8x1024xbf16, #tpu.memory_space<vmem>>, vector<8x1024xbf16>
    tpu.vector_store %arg8[%c0_17, %c0_18], %23 {strides = array<i32>} : memref<8x1024xbf16, #tpu.memory_space<vmem>>, vector<8x1024xbf16>,
    return
  }
  func.func @transform_0(%arg0: i32) -> (i32, i32) {
    %c0_i32 = arith.constant 0 : i32
    %c0_i32_0 = arith.constant 0 : i32
    return %arg0, %c0_i32 : i32, i32
  }
  func.func @transform_1(%arg0: i32) -> (i32, i32) {
    %c0_i32 = arith.constant 0 : i32
    %c0_i32_0 = arith.constant 0 : i32
    %c0_i32_1 = arith.constant 0 : i32
    return %c0_i32, %c0_i32_0 : i32, i32
  }
  func.func @transform_2(%arg0: i32) -> (i32, i32) {
    %c0_i32 = arith.constant 0 : i32
    %c0_i32_0 = arith.constant 0 : i32
    %c0_i32_1 = arith.constant 0 : i32
    return %c0_i32, %c0_i32_0 : i32, i32
  }
  func.func @transform_3(%arg0: i32) -> (i32, i32) {
    %c0_i32 = arith.constant 0 : i32
    %c0_i32_0 = arith.constant 0 : i32
    %c0_i32_1 = arith.constant 0 : i32
    return %c0_i32, %c0_i32_0 : i32, i32
  }
  func.func @transform_4(%arg0: i32) -> (i32, i32) {
    %c0_i32 = arith.constant 0 : i32
    %c0_i32_0 = arith.constant 0 : i32
    %c0_i32_1 = arith.constant 0 : i32
    return %c0_i32, %c0_i32_0 : i32, i32
  }
  func.func @transform_5(%arg0: i32) -> (i32, i32) {
    %c0_i32 = arith.constant 0 : i32
    %c0_i32_0 = arith.constant 0 : i32
    %c0_i32_1 = arith.constant 0 : i32
    return %c0_i32, %c0_i32_0 : i32, i32
  }
  func.func @transform_6(%arg0: i32) -> (i32, i32) {
    %c0_i32 = arith.constant 0 : i32
    %c0_i32_0 = arith.constant 0 : i32
    %c0_i32_1 = arith.constant 0 : i32
    return %c0_i32, %c0_i32_0 : i32, i32
  }
  func.func @transform_7(%arg0: i32) -> (i32, i32) {
    %c0_i32 = arith.constant 0 : i32
    %c0_i32_0 = arith.constant 0 : i32
    return %arg0, %c0_i32 : i32, i32
  }
}

</mosaic_0001>

<bundles_post_ra>
// kernel: generator_forward.1
= control target key start
LH: loop header
LB: loop body
LE: loop exit
PB: predicated region body
PF: predicated region fallthrough
CT: control target
= control target key end

     0   :  { %12 = vsyncpa [#allocation3], 0  ;;  %s1983_s0 = inlined_call_operand.vmem [shape: bf16[8,128], index: 0, kind: input, shape index: {}]   ;;  %s1984_s1 = inlined_call_operand.hbm [shape: bf16[128,256], index: 1, kind: input, shape index: {}]   ;;  %s1985_s2 = inlined_call_operand.vmem [shape: f32[1,256], index: 2, kind: input, shape index: {}]   ;;  %s1986_s3 = inlined_call_operand.hbm [shape: bf16[256,256], index: 3, kind: input, shape index: {}]   ;;  %s1987_s4 = inlined_call_operand.vmem [shape: f32[1,256], index: 4, kind: input, shape index: {}]   ;;  %s1988_s5 = inlined_call_operand.hbm [shape: bf16[256,1024], index: 5, kind: input, shape index: {}]   ;;  %s1989_s6 = inlined_call_operand.vmem [shape: f32[1,1024], index: 6, kind: input, shape index: {}]   ;;  %s1990_s7 = inlined_call_operand.hbm [shape: bf16[8,1024], index: 7, kind: output, shape index: {}]  }
   0x1   :  { %13 = vsyncpa [#allocation6], 0 }
   0x2   :  { %14 = vsyncpa [#allocation4], 0  ;;  %s1873_s24 = smov [#allocation5]   ;;  %s1874_s26 = smov [#allocation2]  }
   0x3   :  { %s36_s25 = sshll.u32 %s1873_s24, 4  ;;  %s22_s27 = sshll.u32 %s1874_s26, 4  ;;  %s37_s25 = int_to_ptr.vmem [resolvable:$true] %s36_s25  ;;  %s23_s27 = int_to_ptr.vmem [resolvable:$true] %s22_s27 }
   0x4   :  { %s1795_s28 = scalar_lea.vmem %s37_s25, 4096  ;;  %p1800_p1 = scmp.lt.s32.totalorder %s37_s25, %s37_s25 }
   0x5   :  { %p1796_p0 = scmp.ne.s32.totalorder %s37_s25, %s1795_s28  ;;  %p1801_p2 = scmp.lt.s32.totalorder %s1795_s28, %s1795_s28 }
   0x7   :  { %p1802_p3 = por %p1801_p2, %p1800_p1 }
   0x9   :  { %p1803_p4 = pnand %p1802_p3, %p1796_p0 }
   0xb   :  { %1806 = shalt.err (!%p1803_p4)
}
   0xc   :  { %s1875_s29 = smov 128   ;;  %s1876_s30 = smov 8  }
   0xd   :  { %42 = dma.hbm_to_vmem [thread:$0]  %s1986_s3, 4096, %s37_s25, [#allocation6], %s1875_s29, %s1875_s29, %s1876_s30  }
   0xe   :  { %s1815_s10 = scalar_lea.vmem %s23_s27, 2048  ;;  %p1820_p6 = scmp.lt.s32.totalorder %s23_s27, %s23_s27 }
   0xf   :  { %p1816_p5 = scmp.ne.s32.totalorder %s23_s27, %s1815_s10  ;;  %p1821_p7 = scmp.lt.s32.totalorder %s1815_s10, %s1815_s10 }
  0x11   :  { %p1822_p8 = por %p1821_p7, %p1820_p6 }
  0x13   :  { %p1823_p9 = pnand %p1822_p8, %p1816_p5 }
  0x15   :  { %1826 = shalt.err (!%p1823_p9)
}
  0x16   :  { %28 = dma.hbm_to_vmem [thread:$0]  %s1984_s1, 2048, %s23_s27, [#allocation3], %s1875_s29, %s1875_s29, %s1876_s30  }
  0x17   :  { %s1877_s13 = smov [#allocation7]  }
  0x18   :  { %s50_s14 = sshll.u32 %s1877_s13, 4  ;;  %s51_s14 = int_to_ptr.vmem [resolvable:$true] %s50_s14 }
  0x19   :  { %s1835_s15 = scalar_lea.vmem %s51_s14, 16384  ;;  %p1840_p11 = scmp.lt.s32.totalorder %s51_s14, %s51_s14 }
  0x1a   :  { %p1836_p10 = scmp.ne.s32.totalorder %s51_s14, %s1835_s15  ;;  %p1841_p12 = scmp.lt.s32.totalorder %s1835_s15, %s1835_s15 }
  0x1c   :  { %p1842_p13 = por %p1841_p12, %p1840_p11 }
  0x1e   :  { %p1843_p0 = pnand %p1842_p13, %p1836_p10 }
  0x20   :  { %1846 = shalt.err (!%p1843_p0)
}
  0x21   :  { %s1878_s3 = smov 512   ;;  %s1879_s16 = smov 32  }
  0x22   :  { %56 = dma.hbm_to_vmem [thread:$0]  %s1988_s5, 16384, %s51_s14, [#allocation6], %s1878_s3, %s1878_s3, %s1879_s16  }
  0x23   :  { %1867 = dma.done.wait [#allocation3], 2048  }
  0x24   :  { %1868 = vsyncadd [#allocation3], 4294965248 }
  0x25   :  { %1869 = dma.done.wait [#allocation6], 20480  }
  0x26   :  { %1870 = vsyncadd [#allocation6], 4294946816  ;;  %v1880_v0 = vmov 0   ;;  %v1699_v1 = vld [vmem:[#allocation2 + $0x74] ss:$8 sps:$4 sm:$0xff]   ;;  %v528_v50 = vld [vmem:[#allocation7 + $0x1c0] sm:$0xff] }
  0x27   :  { %210 = vmatprep.mubr.bf16.mxu0 %v1880_v0  ;;  %v1701_v2 = vld [vmem:[#allocation2 + $0x70] ss:$8 sps:$4 sm:$0xff]   ;;  %178 = vmatprep.subr.bf16.mxu0 %v1699_v1  ;;  %v1702_v3 = vld [vmem:[#allocation2 + $0x64] ss:$8 sps:$4 sm:$0xff]   ;;  %v1704_v4 = vld [vmem:[#allocation2 + $0x60] ss:$8 sps:$4 sm:$0xff]  }
  0x28   :  { %179 = vmatpush1.bf16.msra.mxu0 %v1701_v2  ;;  %v1705_v5 = vld [vmem:[#allocation2 + $0x54] ss:$8 sps:$4 sm:$0xff]   ;;  %v1707_v6 = vld [vmem:[#allocation2 + $0x50] ss:$8 sps:$4 sm:$0xff]   ;;  %v1708_v7 = vld [vmem:[#allocation2 + $0x44] ss:$8 sps:$4 sm:$0xff]  }
  0x29   :  { %180 = vmatprep.subr.bf16.mxu0 %v1702_v3  ;;  %v1710_v8 = vld [vmem:[#allocation2 + $0x40] ss:$8 sps:$4 sm:$0xff]   ;;  %v1711_v9 = vld [vmem:[#allocation2 + $0x34] ss:$8 sps:$4 sm:$0xff]   ;;  %v1725_v11 = vld [vmem:[#allocation5 + $0x70] ss:$8 sps:$4 sm:$0xff]  }
  0x2a   :  { %v1723_v10 = vld [vmem:[#allocation5 + $0x74] ss:$8 sps:$4 sm:$0xff]   ;;  %v1726_v12 = vld [vmem:[#allocation5 + $0x64] ss:$8 sps:$4 sm:$0xff]   ;;  %v1713_v13 = vld [vmem:[#allocation2 + $0x30] ss:$8 sps:$4 sm:$0xff]  }
  0x2b   :  { %427 = vmatprep.subr.bf16.mxu1 %v1723_v10  ;;  %v1728_v14 = vld [vmem:[#allocation5 + $0x60] ss:$8 sps:$4 sm:$0xff]   ;;  %v1729_v15 = vld [vmem:[#allocation5 + $0x54] ss:$8 sps:$4 sm:$0xff]   ;;  %v1714_v16 = vld [vmem:[#allocation2 + $0x24] ss:$8 sps:$4 sm:$0xff]  }
  0x2c   :  { %181 = vmatpush1.bf16.msra.mxu0 %v1704_v4  ;;  %428 = vmatpush1.bf16.msra.mxu1 %v1725_v11  ;;  %v1716_v17 = vld [vmem:[#allocation2 + $0x20] ss:$8 sps:$4 sm:$0xff]   ;;  %v1731_v18 = vld [vmem:[#allocation5 + $0x50] ss:$8 sps:$4 sm:$0xff]   ;;  %v1732_v19 = vld [vmem:[#allocation5 + $0x44] ss:$8 sps:$4 sm:$0xff]  }
  0x2d   :  { %182 = vmatprep.subr.bf16.mxu0 %v1705_v5  ;;  %429 = vmatprep.subr.bf16.mxu1 %v1726_v12  ;;  %v1717_v20 = vld [vmem:[#allocation2 + $0x14] ss:$8 sps:$4 sm:$0xff]   ;;  %v1719_v21 = vld [vmem:[#allocation2 + $0x10] ss:$8 sps:$4 sm:$0xff]   ;;  %v1734_v22 = vld [vmem:[#allocation5 + $0x40] ss:$8 sps:$4 sm:$0xff]  }
  0x2e   :  { %v1735_v23 = vld [vmem:[#allocation5 + $0x34] ss:$8 sps:$4 sm:$0xff]   ;;  %v1720_v24 = vld [vmem:[#allocation2 + $0x4] ss:$8 sps:$4 sm:$0xff]   ;;  %v1722_v25 = vld [vmem:[#allocation2] ss:$8 sps:$4 sm:$0xff]  }
  0x2f   :  { %v1737_v26 = vld [vmem:[#allocation5 + $0x30] ss:$8 sps:$4 sm:$0xff]   ;;  %v1738_v27 = vld [vmem:[#allocation5 + $0x24] ss:$8 sps:$4 sm:$0xff]   ;;  %v1740_v28 = vld [vmem:[#allocation5 + $0x20] ss:$8 sps:$4 sm:$0xff]  }
  0x30   :  { %183 = vmatpush1.bf16.msra.mxu0 %v1707_v6  ;;  %430 = vmatpush1.bf16.msra.mxu1 %v1728_v14  ;;  %v69_v29 = vld [vmem:[%s1983_s0] sm:$0xf]  ;;  %v1741_v30 = vld [vmem:[#allocation5 + $0x14] ss:$8 sps:$4 sm:$0xff]   ;;  %v1743_v31 = vld [vmem:[#allocation5 + $0x10] ss:$8 sps:$4 sm:$0xff]  }
  0x31   :  { %184 = vmatprep.subr.bf16.mxu0 %v1708_v7  ;;  %431 = vmatprep.subr.bf16.mxu1 %v1729_v15  ;;  %v1744_v32 = vld [vmem:[#allocation5 + $0x4] ss:$8 sps:$4 sm:$0xff]   ;;  %v1746_v33 = vld [vmem:[#allocation5] ss:$8 sps:$4 sm:$0xff]   ;;  %v1747_v34 = vld [vmem:[#allocation5 + $0xf4] ss:$8 sps:$4 sm:$0xff]  }
  0x32   :  { %v1749_v35 = vld [vmem:[#allocation5 + $0xf0] ss:$8 sps:$4 sm:$0xff]   ;;  %v1750_v36 = vld [vmem:[#allocation5 + $0xe4] ss:$8 sps:$4 sm:$0xff]   ;;  %v1752_v37 = vld [vmem:[#allocation5 + $0xe0] ss:$8 sps:$4 sm:$0xff]  }
  0x33   :  { %v1753_v38 = vld [vmem:[#allocation5 + $0xd4] ss:$8 sps:$4 sm:$0xff]   ;;  %v1755_v39 = vld [vmem:[#allocation5 + $0xd0] ss:$8 sps:$4 sm:$0xff]   ;;  %v1756_v40 = vld [vmem:[#allocation5 + $0xc4] ss:$8 sps:$4 sm:$0xff]  }
  0x34   :  { %185 = vmatpush1.bf16.msra.mxu0 %v1710_v8  ;;  %432 = vmatpush1.bf16.msra.mxu1 %v1731_v18  ;;  %v1758_v41 = vld [vmem:[#allocation5 + $0xc0] ss:$8 sps:$4 sm:$0xff]   ;;  %v1759_v42 = vld [vmem:[#allocation5 + $0xb4] ss:$8 sps:$4 sm:$0xff]   ;;  %v1761_v43 = vld [vmem:[#allocation5 + $0xb0] ss:$8 sps:$4 sm:$0xff]  }
  0x35   :  { %186 = vmatprep.subr.bf16.mxu0 %v1711_v9  ;;  %433 = vmatprep.subr.bf16.mxu1 %v1732_v19  ;;  %v1762_v44 = vld [vmem:[#allocation5 + $0xa4] ss:$8 sps:$4 sm:$0xff]   ;;  %v1764_v45 = vld [vmem:[#allocation5 + $0xa0] ss:$8 sps:$4 sm:$0xff]   ;;  %v1765_v46 = vld [vmem:[#allocation5 + $0x94] ss:$8 sps:$4 sm:$0xff]  }
  0x36   :  { %v1767_v47 = vld [vmem:[#allocation5 + $0x90] ss:$8 sps:$4 sm:$0xff]   ;;  %v1768_v48 = vld [vmem:[#allocation5 + $0x84] ss:$8 sps:$4 sm:$0xff]   ;;  %v1770_v49 = vld [vmem:[#allocation5 + $0x80] ss:$8 sps:$4 sm:$0xff]  }
  0x37   :  { %v532_v51 = vld [vmem:[#allocation7 + $0x1e0] sm:$0xff]  ;;  %v1934_v52 = vld [vmem:[#allocation7 + $0x1c8] sm:$0xff] }
  0x38   :  { %187 = vmatpush1.bf16.msra.mxu0 %v1713_v13  ;;  %434 = vmatpush1.bf16.msra.mxu1 %v1734_v22  ;;  %v1610_v53 = vcombine.low %v528_v50, %v532_v51  ;;  %v1611_v54 = vcombine.high %v528_v50, %v532_v51  ;;  %v1936_v55 = vld [vmem:[#allocation7 + $0x1e8] sm:$0xff]  ;;  %v520_v56 = vld [vmem:[#allocation7 + $0x180] sm:$0xff] }
  0x39   :  { %188 = vmatprep.subr.bf16.mxu0 %v1714_v16  ;;  %435 = vmatprep.subr.bf16.mxu1 %v1735_v23  ;;  %v524_v57 = vld [vmem:[#allocation7 + $0x1a0] sm:$0xff]  ;;  %v1612_v58 = vcombine.low %v1934_v52, %v1936_v55  ;;  %v1613_v59 = vcombine.high %v1934_v52, %v1936_v55 }
  0x3a   :  { %v1603_v60 = vcombine.high %v520_v56, %v524_v57  ;;  %v1602_v61 = vcombine.low %v520_v56, %v524_v57  ;;  %v512_v62 = vld [vmem:[#allocation7 + $0x140] sm:$0xff] }
  0x3b   :  { %v516_v63 = vld [vmem:[#allocation7 + $0x160] sm:$0xff] }
  0x3c   :  { %189 = vmatpush1.bf16.msra.mxu0 %v1716_v17  ;;  %436 = vmatpush1.bf16.msra.mxu1 %v1737_v26  ;;  %v1595_v0 = vcombine.high %v512_v62, %v516_v63  ;;  %v1594_v1 = vcombine.low %v512_v62, %v516_v63  ;;  %v504_v2 = vld [vmem:[#allocation7 + $0x100] sm:$0xff]  ;;  %v521_v63 = vld [vmem:[#allocation7 + $0x188] sm:$0xff] }
  0x3d   :  { %190 = vmatprep.subr.bf16.mxu0 %v1717_v20  ;;  %437 = vmatprep.subr.bf16.mxu1 %v1738_v27  ;;  %v508_v3 = vld [vmem:[#allocation7 + $0x120] sm:$0xff] }
  0x3e   :  { %v1587_v4 = vcombine.high %v504_v2, %v508_v3  ;;  %v1586_v5 = vcombine.low %v504_v2, %v508_v3  ;;  %v496_v6 = vld [vmem:[#allocation7 + $0xc0] sm:$0xff] }
  0x3f   :  { %v500_v7 = vld [vmem:[#allocation7 + $0xe0] sm:$0xff] }
  0x40   :  { %191 = vmatpush1.bf16.msra.mxu0 %v1719_v21  ;;  %438 = vmatpush1.bf16.msra.mxu1 %v1740_v28  ;;  %v1579_v8 = vcombine.high %v496_v6, %v500_v7  ;;  %v1578_v9 = vcombine.low %v496_v6, %v500_v7  ;;  %v488_v10 = vld [vmem:[#allocation7 + $0x80] sm:$0xff]  ;;  %v517_v6 = vld [vmem:[#allocation7 + $0x168] sm:$0xff] }
  0x41   :  { %192 = vmatprep.subr.bf16.mxu0 %v1720_v24  ;;  %439 = vmatprep.subr.bf16.mxu1 %v1741_v30  ;;  %v492_v11 = vld [vmem:[#allocation7 + $0xa0] sm:$0xff] }
  0x42   :  { %v1571_v12 = vcombine.high %v488_v10, %v492_v11  ;;  %v1570_v13 = vcombine.low %v488_v10, %v492_v11  ;;  %v480_v14 = vld [vmem:[#allocation7 + $0x40] sm:$0xff]  ;;  %v509_v10 = vld [vmem:[#allocation7 + $0x128] sm:$0xff] }
  0x43   :  { %v484_v15 = vld [vmem:[#allocation7 + $0x60] sm:$0xff] }
  0x44   :  { %193 = vmatpush1.bf16.msra.mxu0 %v1722_v25  ;;  %440 = vmatpush1.bf16.msra.mxu1 %v1743_v31  ;;  %v1563_v16 = vcombine.high %v480_v14, %v484_v15  ;;  %v1562_v17 = vcombine.low %v480_v14, %v484_v15  ;;  %v472_v18 = vld [vmem:[#allocation7] sm:$0xff]  ;;  %v501_v14 = vld [vmem:[#allocation7 + $0xe8] sm:$0xff] }
  0x45   :  { %441 = vmatprep.subr.bf16.mxu1 %v1744_v32  ;;  %1282 = vmatprep.subr.bf16.mxu0 %v1611_v54  ;;  %v476_v19 = vld [vmem:[#allocation7 + $0x20] sm:$0xff] }
  0x46   :  { %v1555_v20 = vcombine.high %v472_v18, %v476_v19  ;;  %v1554_v21 = vcombine.low %v472_v18, %v476_v19  ;;  %v592_v22 = vld [vmem:[#allocation7 + $0x3c0] sm:$0xff]  ;;  %v493_v18 = vld [vmem:[#allocation7 + $0xa8] sm:$0xff] }
  0x47   :  { %211 = vmatmul.mubr.bf16.vlgmr.msra.gmra.mxu0 %v69_v29  ;;  %v596_v23 = vld [vmem:[#allocation7 + $0x3e0] sm:$0xff]  ;;  %v485_v19 = vld [vmem:[#allocation7 + $0x68] sm:$0xff] }
  0x48   :  { %442 = vmatpush1.bf16.msra.mxu1 %v1746_v33  ;;  %1283 = vmatpush1.bf16.msra.mxu0 %v1610_v53  ;;  %v1675_v24 = vcombine.high %v592_v22, %v596_v23  ;;  %v1674_v25 = vcombine.low %v592_v22, %v596_v23  ;;  %v584_v26 = vld [vmem:[#allocation7 + $0x380] sm:$0xff]  ;;  %v473_v22 = vld [vmem:[#allocation7 + $0x8] sm:$0xff] }
  0x49   :  { %443 = vmatprep.subr.bf16.mxu1 %v1747_v34  ;;  %1284 = vmatprep.subr.bf16.mxu0 %v1603_v60  ;;  %v588_v27 = vld [vmem:[#allocation7 + $0x3a0] sm:$0xff]  ;;  %v477_v23 = vld [vmem:[#allocation7 + $0x28] sm:$0xff] }
  0x4a   :  { %v1667_v28 = vcombine.high %v584_v26, %v588_v27  ;;  %v1666_v29 = vcombine.low %v584_v26, %v588_v27  ;;  %v576_v30 = vld [vmem:[#allocation7 + $0x340] sm:$0xff]  ;;  %v593_v26 = vld [vmem:[#allocation7 + $0x3c8] sm:$0xff] }
  0x4b   :  { %v580_v31 = vld [vmem:[#allocation7 + $0x360] sm:$0xff]  ;;  %v597_v27 = vld [vmem:[#allocation7 + $0x3e8] sm:$0xff] }
  0x4c   :  { %444 = vmatpush2.bf16.msra.mxu1 %v1749_v35  ;;  %1285 = vmatpush1.bf16.msra.mxu0 %v1602_v61  ;;  %v1659_v32 = vcombine.high %v576_v30, %v580_v31  ;;  %v1658_v33 = vcombine.low %v576_v30, %v580_v31  ;;  %v568_v34 = vld [vmem:[#allocation7 + $0x300] sm:$0xff]  ;;  %v585_v30 = vld [vmem:[#allocation7 + $0x388] sm:$0xff] }
  0x4d   :  { %445 = vmatprep.subr.bf16.mxu1 %v1750_v36  ;;  %1286 = vmatprep.subr.bf16.mxu0 %v1595_v0  ;;  %v572_v35 = vld [vmem:[#allocation7 + $0x320] sm:$0xff]  ;;  %v525_v0 = vld [vmem:[#allocation7 + $0x1a8] sm:$0xff] }
  0x4e   :  { %v1651_v36 = vcombine.high %v568_v34, %v572_v35  ;;  %v1604_v7 = vcombine.low %v521_v63, %v525_v0  ;;  %v589_v31 = vld [vmem:[#allocation7 + $0x3a8] sm:$0xff] }
  0x50   :  { %446 = vmatpush2.bf16.msra.mxu1 %v1752_v37  ;;  %1287 = vmatpush1.bf16.msra.mxu0 %v1594_v1  ;;  %v1650_v37 = vcombine.low %v568_v34, %v572_v35  ;;  %v577_v34 = vld [vmem:[#allocation7 + $0x348] sm:$0xff] }
  0x51   :  { %447 = vmatprep.subr.bf16.mxu1 %v1753_v38  ;;  %1288 = vmatprep.subr.bf16.mxu0 %v1587_v4  ;;  %v560_v38 = vld [vmem:[#allocation7 + $0x2c0] sm:$0xff]  ;;  %v1605_v4 = vcombine.high %v521_v63, %v525_v0  ;;  %v581_v35 = vld [vmem:[#allocation7 + $0x368] sm:$0xff] }
  0x54   :  { %448 = vmatpush2.bf16.msra.mxu1 %v1755_v39  ;;  %1289 = vmatpush1.bf16.msra.mxu0 %v1586_v5  ;;  %v564_v39 = vld [vmem:[#allocation7 + $0x2e0] sm:$0xff]  ;;  %v513_v5 = vld [vmem:[#allocation7 + $0x148] sm:$0xff] }
  0x55   :  { %449 = vmatprep.subr.bf16.mxu1 %v1756_v40  ;;  %1290 = vmatprep.subr.bf16.mxu0 %v1579_v8  ;;  %v1643_v40 = vcombine.high %v560_v38, %v564_v39  ;;  %v1597_v8 = vcombine.high %v513_v5, %v517_v6  ;;  %v1596_v11 = vcombine.low %v513_v5, %v517_v6  ;;  %v541_v5 = vld [vmem:[#allocation7 + $0x228] sm:$0xff] }
  0x58   :  { %450 = vmatpush2.bf16.msra.mxu1 %v1758_v41  ;;  %1291 = vmatpush1.bf16.msra.mxu0 %v1578_v9  ;;  %v1642_v41 = vcombine.low %v560_v38, %v564_v39  ;;  %v505_v9 = vld [vmem:[#allocation7 + $0x108] sm:$0xff] }
  0x59   :  { %451 = vmatprep.subr.bf16.mxu1 %v1759_v42  ;;  %1292 = vmatprep.subr.bf16.mxu0 %v1571_v12  ;;  %v552_v42 = vld [vmem:[#allocation7 + $0x280] sm:$0xff]  ;;  %v1589_v12 = vcombine.high %v505_v9, %v509_v10  ;;  %v1588_v15 = vcombine.low %v505_v9, %v509_v10  ;;  %v569_v38 = vld [vmem:[#allocation7 + $0x308] sm:$0xff]  ;;  %v530_v9 = vld [vmem:[#allocation7 + $0x1d0] sm:$0xff] }
  0x5a   :  { %v573_v39 = vld [vmem:[#allocation7 + $0x328] sm:$0xff]  ;;  %v534_v10 = vld [vmem:[#allocation7 + $0x1f0] sm:$0xff] }
  0x5c   :  { %452 = vmatpush2.bf16.msra.mxu1 %v1761_v43  ;;  %1293 = vmatpush1.bf16.msra.mxu0 %v1570_v13  ;;  %v556_v43 = vld [vmem:[#allocation7 + $0x2a0] sm:$0xff]  ;;  %v497_v13 = vld [vmem:[#allocation7 + $0xc8] sm:$0xff] }
  0x5d   :  { %453 = vmatprep.subr.bf16.mxu1 %v1762_v44  ;;  %1294 = vmatprep.subr.bf16.mxu0 %v1563_v16  ;;  %v1635_v44 = vcombine.high %v552_v42, %v556_v43  ;;  %v1581_v16 = vcombine.high %v497_v13, %v501_v14  ;;  %v1580_v52 = vcombine.low %v497_v13, %v501_v14  ;;  %v535_v13 = vld [vmem:[#allocation7 + $0x1f8] sm:$0xff] }
  0x5e   :  { %v1614_v14 = vcombine.low %v530_v9, %v534_v10 }
  0x60   :  { %454 = vmatpush2.bf16.msra.mxu1 %v1764_v45  ;;  %1295 = vmatpush1.bf16.msra.mxu0 %v1562_v17  ;;  %v1634_v45 = vcombine.low %v552_v42, %v556_v43  ;;  %v489_v17 = vld [vmem:[#allocation7 + $0x88] sm:$0xff] }
  0x61   :  { %455 = vmatprep.subr.bf16.mxu1 %v1765_v46  ;;  %1296 = vmatprep.subr.bf16.mxu0 %v1555_v20  ;;  %v88_v46 = vlaneseq  ;;  %v1573_v55 = vcombine.high %v489_v17, %v493_v18  ;;  %v1572_v20 = vcombine.low %v489_v17, %v493_v18  ;;  %v561_v42 = vld [vmem:[#allocation7 + $0x2c8] sm:$0xff]  ;;  %v255_v17 = vld [vmem:[%s1987_s4] sm:$0x3] }
  0x62   :  { %v565_v43 = vld [vmem:[#allocation7 + $0x2e8] sm:$0xff] }
  0x64   :  { %456 = vmatpush2.bf16.msra.mxu1 %v1767_v47  ;;  %1297 = vmatpush1.bf16.msra.mxu0 %v1554_v21  ;;  %v1942_v47 = vshrl.u32 %v88_v46, 7  ;;  %v553_v46 = vld [vmem:[#allocation7 + $0x288] sm:$0xff] }
  0x65   :  { %457 = vmatprep.subr.bf16.mxu1 %v1768_v48  ;;  %1298 = vmatprep.subr.bf16.mxu0 %v1675_v24 }
  0x66   :  { %v1945_v48 = vsub.s32 0, %v1942_v47  ;;  %v1951_v50 = vsub.s32 1, %v1942_v47 }
  0x68   :  { %458 = vmatpush2.bf16.msra.mxu1 %v1770_v49  ;;  %1299 = vmatpush2.bf16.msra.mxu0 %v1674_v25  ;;  %v86_v49 = vld [vmem:[%s1985_s2] sm:$0x3]  ;;  %v1557_v25 = vcombine.high %v473_v22, %v477_v23  ;;  %v260_v18 = vrot.slane %v255_v17, %v1945_v48 }
  0x69   :  { %1323 = vmatprep.subr.bf16.mxu1 %v1613_v59  ;;  %1300 = vmatprep.subr.bf16.mxu0 %v1667_v28  ;;  %v91_v51 = vrot.slane %v86_v49, %v1945_v48  ;;  %v95_v53 = vrot.slane %v86_v49, %v1951_v50  ;;  %v1556_v28 = vcombine.low %v473_v22, %v477_v23  ;;  %v557_v49 = vld [vmem:[#allocation7 + $0x2a8] sm:$0xff] }
  0x6c   :  { %1301 = vmatpush2.bf16.msra.mxu0 %v1666_v29  ;;  %v1677_v29 = vcombine.high %v593_v26, %v597_v27 }
  0x6d   :  { %1302 = vmatprep.subr.bf16.mxu0 %v1659_v32  ;;  %v1676_v32 = vcombine.low %v593_v26, %v597_v27  ;;  %v526_v26 = vld [vmem:[#allocation7 + $0x1b0] sm:$0xff]  ;;  %v523_v27 = vld [vmem:[#allocation7 + $0x198] sm:$0xff] }
  0x70   :  { %1303 = vmatpush2.bf16.msra.mxu0 %v1658_v33  ;;  %v1669_v33 = vcombine.high %v585_v30, %v589_v31 }
  0x71   :  { %1304 = vmatprep.subr.bf16.mxu0 %v1651_v36  ;;  %v1668_v36 = vcombine.low %v585_v30, %v589_v31  ;;  %v514_v31 = vld [vmem:[#allocation7 + $0x150] sm:$0xff] }
  0x74   :  { %1305 = vmatpush2.bf16.msra.mxu0 %v1650_v37  ;;  %v1661_v37 = vcombine.high %v577_v34, %v581_v35 }
  0x75   :  { %1306 = vmatprep.subr.bf16.mxu0 %v1643_v40  ;;  %v1660_v40 = vcombine.low %v577_v34, %v581_v35  ;;  %v518_v34 = vld [vmem:[#allocation7 + $0x170] sm:$0xff]  ;;  %v515_v35 = vld [vmem:[#allocation7 + $0x158] sm:$0xff] }
  0x78   :  { %1307 = vmatpush2.bf16.msra.mxu0 %v1642_v41  ;;  %v1653_v41 = vcombine.high %v569_v38, %v573_v39 }
  0x79   :  { %1308 = vmatprep.subr.bf16.mxu0 %v1635_v44  ;;  %v1652_v44 = vcombine.low %v569_v38, %v573_v39  ;;  %v1599_v39 = vcombine.high %v514_v31, %v518_v34 }
  0x7c   :  { %1309 = vmatpush2.bf16.msra.mxu0 %v1634_v45  ;;  %v1645_v45 = vcombine.high %v561_v42, %v565_v43 }
 0x107   :  { %v212_v54 = vpop.f32.mrf.mxu0 }
 0x108   :  { %v213_v56 = vadd.f32 %v212_v54, %v91_v51  ;;  %v1644_v51 = vcombine.low %v561_v42, %v565_v43  ;;  %v1636_v54 = vcombine.low %v553_v46, %v557_v49  ;;  %v510_v42 = vld [vmem:[#allocation7 + $0x130] sm:$0xff]  ;;  %v507_v43 = vld [vmem:[#allocation7 + $0x118] sm:$0xff] }
 0x109   :  { %v214_v57 = vpop.f32.mrf.mxu0 }
 0x10a   :  { %v215_v59 = vadd.f32 %v214_v57, %v95_v53  ;;  %v219_v60 = vmax.f32 %v213_v56, 0.0  ;;  %v1637_v53 = vcombine.high %v553_v46, %v557_v49  ;;  %v544_v56 = vld [vmem:[#allocation7 + $0x240] sm:$0xff] }
 0x10b   :  { %v216_v61 = vpop.f32.mrf.mxu0  ;;  %v548_v57 = vld [vmem:[#allocation7 + $0x260] sm:$0xff] }
 0x10c   :  { %v220_v62 = vmax.f32 %v215_v59, 0.0  ;;  %v221_v3 = vpack.c.bf16 %v219_v60, %v219_v60  ;;  %v545_v59 = vld [vmem:[#allocation7 + $0x248] sm:$0xff]  ;;  %v1627_v60 = vcombine.high %v544_v56, %v548_v57 }
 0x10d   :  { %v217_v1 = vpop.f32.mrf.mxu0  ;;  %v549_v61 = vld [vmem:[#allocation7 + $0x268] sm:$0xff] }
 0x10e   :  { %v222_v2 = vpack.c.bf16 %v220_v62, %v220_v62  ;;  %v1626_v62 = vcombine.low %v544_v56, %v548_v57  ;;  %v1628_v63 = vcombine.low %v545_v59, %v549_v61  ;;  %v1629_v0 = vcombine.high %v545_v59, %v549_v61  ;;  %1310 = vmatprep.subr.bf16.mxu0 %v1627_v60  ;;  %v536_v1 = vld [vmem:[#allocation7 + $0x200] sm:$0xff]  ;;  %v499_v56 = vld [vmem:[#allocation7 + $0xd8] sm:$0xff] }
 0x10f   :  { %v503_v57 = vld [vmem:[#allocation7 + $0xf8] sm:$0xff] }
 0x110   :  { %459 = vmatprep.mubr.bf16.mxu1 %v222_v2  ;;  %1311 = vmatpush2.bf16.msra.mxu0 %v1626_v62  ;;  %v540_v2 = vld [vmem:[#allocation7 + $0x220] sm:$0xff]  ;;  %v1585_v62 = vcombine.high %v499_v56, %v503_v57 }
 0x111   :  { %460 = vmatmul.mubr.bf16.vlgmr.msra.gmra.mxu1 %v221_v3  ;;  %v537_v3 = vld [vmem:[#allocation7 + $0x208] sm:$0xff]  ;;  %v1618_v6 = vcombine.low %v536_v1, %v540_v2 }
 0x112   :  { %1324 = vmatpush1.bf16.msra.mxu1 %v1612_v58  ;;  %v481_v58 = vld [vmem:[#allocation7 + $0x48] sm:$0xff] }
 0x113   :  { %1325 = vmatprep.subr.bf16.mxu1 %v1605_v4  ;;  %v1565_v21 = vcombine.high %v481_v58, %v485_v19  ;;  %v1564_v24 = vcombine.low %v481_v58, %v485_v19  ;;  %v1619_v4 = vcombine.high %v536_v1, %v540_v2  ;;  %v491_v1 = vld [vmem:[#allocation7 + $0x98] sm:$0xff] }
 0x114   :  { %v495_v2 = vld [vmem:[#allocation7 + $0xb8] sm:$0xff] }
 0x115   :  { %1312 = vmatprep.subr.bf16.mxu0 %v1619_v4  ;;  %v1584_v4 = vcombine.low %v499_v56, %v503_v57 }
 0x116   :  { %1326 = vmatpush1.bf16.msra.mxu1 %v1604_v7  ;;  %v1620_v7 = vcombine.low %v537_v3, %v541_v5  ;;  %1313 = vmatpush2.bf16.msra.mxu0 %v1618_v6  ;;  %v1577_v6 = vcombine.high %v491_v1, %v495_v2 }
 0x117   :  { %1327 = vmatprep.subr.bf16.mxu1 %v1597_v8  ;;  %v1621_v8 = vcombine.high %v537_v3, %v541_v5 }
 0x11a   :  { %1328 = vmatpush1.bf16.msra.mxu1 %v1596_v11  ;;  %v531_v11 = vld [vmem:[#allocation7 + $0x1d8] sm:$0xff] }
 0x11b   :  { %1329 = vmatprep.subr.bf16.mxu1 %v1589_v12  ;;  %v1615_v12 = vcombine.high %v530_v9, %v534_v10  ;;  %v483_v9 = vld [vmem:[#allocation7 + $0x58] sm:$0xff] }
 0x11c   :  { %v487_v10 = vld [vmem:[#allocation7 + $0x78] sm:$0xff] }
 0x11d   :  { %1364 = vmatprep.subr.bf16.mxu0 %v1615_v12  ;;  %v1576_v12 = vcombine.low %v491_v1, %v495_v2 }
 0x11e   :  { %1330 = vmatpush1.bf16.msra.mxu1 %v1588_v15  ;;  %v1616_v15 = vcombine.low %v531_v11, %v535_v13 }
 0x11f   :  { %1331 = vmatprep.subr.bf16.mxu1 %v1581_v16  ;;  %v1617_v16 = vcombine.high %v531_v11, %v535_v13 }
 0x122   :  { %1332 = vmatpush1.bf16.msra.mxu1 %v1580_v52  ;;  %v264_v52 = vrot.slane %v255_v17, %v1951_v50  ;;  %v475_v17 = vld [vmem:[#allocation7 + $0x18] sm:$0xff] }
 0x123   :  { %1333 = vmatprep.subr.bf16.mxu1 %v1573_v55 }
 0x126   :  { %1334 = vmatpush1.bf16.msra.mxu1 %v1572_v20 }
 0x127   :  { %1335 = vmatprep.subr.bf16.mxu1 %v1565_v21 }
 0x12a   :  { %1336 = vmatpush1.bf16.msra.mxu1 %v1564_v24  ;;  %v522_v24 = vld [vmem:[#allocation7 + $0x190] sm:$0xff] }
 0x12b   :  { %1337 = vmatprep.subr.bf16.mxu1 %v1557_v25 }
 0x12e   :  { %1338 = vmatpush1.bf16.msra.mxu1 %v1556_v28  ;;  %v527_v28 = vld [vmem:[#allocation7 + $0x1b8] sm:$0xff] }
 0x12f   :  { %1339 = vmatprep.subr.bf16.mxu1 %v1677_v29  ;;  %v1608_v38 = vcombine.low %v523_v27, %v527_v28 }
 0x132   :  { %1340 = vmatpush2.bf16.msra.mxu1 %v1676_v32  ;;  %v1607_v32 = vcombine.high %v522_v24, %v526_v26 }
 0x133   :  { %1341 = vmatprep.subr.bf16.mxu1 %v1669_v33  ;;  %v1609_v33 = vcombine.high %v523_v27, %v527_v28  ;;  %v586_v28 = vld [vmem:[#allocation7 + $0x390] sm:$0xff] }
 0x136   :  { %1342 = vmatpush2.bf16.msra.mxu1 %v1668_v36  ;;  %v519_v36 = vld [vmem:[#allocation7 + $0x178] sm:$0xff] }
 0x137   :  { %1343 = vmatprep.subr.bf16.mxu1 %v1661_v37  ;;  %v1606_v37 = vcombine.low %v522_v24, %v526_v26  ;;  %v1600_v46 = vcombine.low %v515_v35, %v519_v36 }
 0x13a   :  { %1344 = vmatpush2.bf16.msra.mxu1 %v1660_v40  ;;  %v1601_v40 = vcombine.high %v515_v35, %v519_v36 }
 0x13b   :  { %1345 = vmatprep.subr.bf16.mxu1 %v1653_v41  ;;  %v506_v41 = vld [vmem:[#allocation7 + $0x110] sm:$0xff] }
 0x13c   :  { %v1591_v49 = vcombine.high %v506_v41, %v510_v42  ;;  %v1590_v59 = vcombine.low %v506_v41, %v510_v42 }
 0x13e   :  { %1346 = vmatpush2.bf16.msra.mxu1 %v1652_v44  ;;  %v511_v44 = vld [vmem:[#allocation7 + $0x138] sm:$0xff] }
 0x13f   :  { %1347 = vmatprep.subr.bf16.mxu1 %v1645_v45  ;;  %v1598_v45 = vcombine.low %v514_v31, %v518_v34  ;;  %v1592_v60 = vcombine.low %v507_v43, %v511_v44  ;;  %v587_v31 = vld [vmem:[#allocation7 + $0x398] sm:$0xff] }
 0x142   :  { %1348 = vmatpush2.bf16.msra.mxu1 %v1644_v51  ;;  %v1593_v51 = vcombine.high %v507_v43, %v511_v44 }
 0x143   :  { %1349 = vmatprep.subr.bf16.mxu1 %v1637_v53  ;;  %v498_v53 = vld [vmem:[#allocation7 + $0xd0] sm:$0xff] }
 0x146   :  { %1350 = vmatpush2.bf16.msra.mxu1 %v1636_v54  ;;  %v502_v54 = vld [vmem:[#allocation7 + $0xf0] sm:$0xff] }
 0x147   :  { %1351 = vmatprep.subr.bf16.mxu1 %v1629_v0  ;;  %v1583_v61 = vcombine.high %v498_v53, %v502_v54  ;;  %v494_v0 = vld [vmem:[#allocation7 + $0xb0] sm:$0xff]  ;;  %v1582_v3 = vcombine.low %v498_v53, %v502_v54 }
 0x14a   :  { %1352 = vmatpush2.bf16.msra.mxu1 %v1628_v63  ;;  %v490_v63 = vld [vmem:[#allocation7 + $0x90] sm:$0xff] }
 0x14b   :  { %1353 = vmatprep.subr.bf16.mxu1 %v1621_v8  ;;  %v1575_v5 = vcombine.high %v490_v63, %v494_v0  ;;  %v486_v8 = vld [vmem:[#allocation7 + $0x70] sm:$0xff]  ;;  %v1574_v11 = vcombine.low %v490_v63, %v494_v0 }
 0x14e   :  { %1354 = vmatpush2.bf16.msra.mxu1 %v1620_v7  ;;  %v482_v7 = vld [vmem:[#allocation7 + $0x50] sm:$0xff] }
 0x14f   :  { %1405 = vmatprep.subr.bf16.mxu1 %v1617_v16  ;;  %v1567_v13 = vcombine.high %v482_v7, %v486_v8  ;;  %v478_v16 = vld [vmem:[#allocation7 + $0x30] sm:$0xff] }
 0x1d1   :  { %v461_v55 = vpop.f32.mrf.mxu1 }
 0x1d2   :  { %v462_v58 = vadd.f32 %v461_v55, %v260_v18  ;;  %v479_v18 = vld [vmem:[#allocation7 + $0x38] sm:$0xff]  ;;  %v1568_v55 = vcombine.low %v483_v9, %v487_v10 }
 0x1d3   :  { %v463_v19 = vpop.f32.mrf.mxu1 }
 0x1d4   :  { %v464_v20 = vadd.f32 %v463_v19, %v264_v52  ;;  %v468_v21 = vmax.f32 %v462_v58, 0.0  ;;  %v1566_v52 = vcombine.low %v482_v7, %v486_v8  ;;  %v1561_v19 = vcombine.high %v475_v17, %v479_v18 }
 0x1d5   :  { %v465_v22 = vpop.f32.mrf.mxu1 }
 0x1d6   :  { %v469_v23 = vmax.f32 %v464_v20, 0.0  ;;  %v1963_v30 = vpack.c.bf16 %v468_v21, %v468_v21  ;;  %v594_v20 = vld [vmem:[#allocation7 + $0x3d0] sm:$0xff]  ;;  %v595_v22 = vld [vmem:[#allocation7 + $0x3d8] sm:$0xff] }
 0x1d7   :  { %v466_v25 = vpop.f32.mrf.mxu1  ;;  %v598_v21 = vld [vmem:[#allocation7 + $0x3f0] sm:$0xff] }
 0x1d8   :  { %v471_v29 = vpack.c.bf16 %v469_v23, %v469_v23  ;;  %v599_v23 = vld [vmem:[#allocation7 + $0x3f8] sm:$0xff]  ;;  %v1560_v25 = vcombine.low %v475_v17, %v479_v18  ;;  %v1679_v26 = vcombine.high %v594_v20, %v598_v21 }
 0x1d9   :  { %v1681_v27 = vcombine.high %v595_v22, %v599_v23  ;;  %v1680_v34 = vcombine.low %v595_v22, %v599_v23 }
 0x1da   :  { %1314 = vmatprep.mubr.bf16.mxu0 %v471_v29  ;;  %1355 = vmatprep.mubr.bf16.mxu1 %v471_v29 }
 0x1db   :  { %1315 = vmatmul.mubr.bf16.vlgmr.msra.gmra.mxu0 %v1963_v30  ;;  %1356 = vmatmul.mubr.bf16.vlgmr.msra.gmra.mxu1 %v1963_v30 }
 0x1dc   :  { %1365 = vmatpush1.bf16.msra.mxu0 %v1614_v14  ;;  %1406 = vmatpush1.bf16.msra.mxu1 %v1616_v15  ;;  %v1569_v14 = vcombine.high %v483_v9, %v487_v10  ;;  %v474_v15 = vld [vmem:[#allocation7 + $0x10] sm:$0xff] }
 0x1dd   :  { %1396 = vmatprep.mubr.bf16.mxu0 %v471_v29  ;;  %1437 = vmatprep.mubr.bf16.mxu1 %v471_v29  ;;  %v1559_v58 = vcombine.high %v474_v15, %v478_v16  ;;  %v1558_v24 = vcombine.low %v474_v15, %v478_v16  ;;  %v590_v29 = vld [vmem:[#allocation7 + $0x3b0] sm:$0xff] }
 0x1de   :  { %1366 = vmatprep.subr.bf16.mxu0 %v1607_v32  ;;  %1407 = vmatprep.subr.bf16.mxu1 %v1609_v33  ;;  %v591_v32 = vld [vmem:[#allocation7 + $0x3b8] sm:$0xff]  ;;  %v1678_v33 = vcombine.low %v594_v20, %v598_v21  ;;  %v1671_v35 = vcombine.high %v586_v28, %v590_v29  ;;  %v1670_v41 = vcombine.low %v586_v28, %v590_v29  ;;  %v616_v28 = vsub.s32 3, %v1942_v47 }
 0x1df   :  { %v1673_v36 = vcombine.high %v587_v31, %v591_v32  ;;  %v1672_v42 = vcombine.low %v587_v31, %v591_v32 }
 0x1e0   :  { %1367 = vmatpush1.bf16.msra.mxu0 %v1606_v37  ;;  %1408 = vmatpush1.bf16.msra.mxu1 %v1608_v38  ;;  %v578_v37 = vld [vmem:[#allocation7 + $0x350] sm:$0xff] }
 0x1e1   :  { %1368 = vmatprep.subr.bf16.mxu0 %v1599_v39  ;;  %1409 = vmatprep.subr.bf16.mxu1 %v1601_v40  ;;  %v582_v38 = vld [vmem:[#allocation7 + $0x370] sm:$0xff]  ;;  %v579_v39 = vld [vmem:[#allocation7 + $0x358] sm:$0xff] }
 0x1e2   :  { %v583_v40 = vld [vmem:[#allocation7 + $0x378] sm:$0xff]  ;;  %v1663_v43 = vcombine.high %v578_v37, %v582_v38  ;;  %v1662_v53 = vcombine.low %v578_v37, %v582_v38 }
 0x1e3   :  { %v1665_v44 = vcombine.high %v579_v39, %v583_v40  ;;  %v1664_v54 = vcombine.low %v579_v39, %v583_v40 }
 0x1e4   :  { %1369 = vmatpush1.bf16.msra.mxu0 %v1598_v45  ;;  %1410 = vmatpush1.bf16.msra.mxu1 %v1600_v46  ;;  %v570_v45 = vld [vmem:[#allocation7 + $0x310] sm:$0xff] }
 0x1e5   :  { %1370 = vmatprep.subr.bf16.mxu0 %v1591_v49  ;;  %1411 = vmatprep.subr.bf16.mxu1 %v1593_v51  ;;  %v574_v46 = vld [vmem:[#allocation7 + $0x330] sm:$0xff]  ;;  %v571_v49 = vld [vmem:[#allocation7 + $0x318] sm:$0xff] }
 0x1e6   :  { %v575_v51 = vld [vmem:[#allocation7 + $0x338] sm:$0xff]  ;;  %v1655_v56 = vcombine.high %v570_v45, %v574_v46  ;;  %v1654_v63 = vcombine.low %v570_v45, %v574_v46 }
 0x1e7   :  { %v1657_v57 = vcombine.high %v571_v49, %v575_v51  ;;  %v1656_v0 = vcombine.low %v571_v49, %v575_v51 }
 0x1e8   :  { %1371 = vmatpush1.bf16.msra.mxu0 %v1590_v59  ;;  %1412 = vmatpush1.bf16.msra.mxu1 %v1592_v60  ;;  %v562_v59 = vld [vmem:[#allocation7 + $0x2d0] sm:$0xff] }
 0x1e9   :  { %1372 = vmatprep.subr.bf16.mxu0 %v1583_v61  ;;  %1413 = vmatprep.subr.bf16.mxu1 %v1585_v62  ;;  %v566_v60 = vld [vmem:[#allocation7 + $0x2f0] sm:$0xff]  ;;  %v563_v61 = vld [vmem:[#allocation7 + $0x2d8] sm:$0xff] }
 0x1ea   :  { %v567_v62 = vld [vmem:[#allocation7 + $0x2f8] sm:$0xff]  ;;  %v1647_v1 = vcombine.high %v562_v59, %v566_v60  ;;  %v1646_v7 = vcombine.low %v562_v59, %v566_v60 }
 0x1eb   :  { %v1649_v2 = vcombine.high %v563_v61, %v567_v62  ;;  %v1648_v8 = vcombine.low %v563_v61, %v567_v62 }
 0x1ec   :  { %1373 = vmatpush1.bf16.msra.mxu0 %v1582_v3  ;;  %1414 = vmatpush1.bf16.msra.mxu1 %v1584_v4  ;;  %v554_v3 = vld [vmem:[#allocation7 + $0x290] sm:$0xff] }
 0x1ed   :  { %1374 = vmatprep.subr.bf16.mxu0 %v1575_v5  ;;  %1415 = vmatprep.subr.bf16.mxu1 %v1577_v6  ;;  %v558_v4 = vld [vmem:[#allocation7 + $0x2b0] sm:$0xff]  ;;  %v555_v5 = vld [vmem:[#allocation7 + $0x298] sm:$0xff] }
 0x1ee   :  { %v559_v6 = vld [vmem:[#allocation7 + $0x2b8] sm:$0xff]  ;;  %v1639_v9 = vcombine.high %v554_v3, %v558_v4  ;;  %v1638_v15 = vcombine.low %v554_v3, %v558_v4 }
 0x1ef   :  { %v1641_v10 = vcombine.high %v555_v5, %v559_v6  ;;  %v1640_v16 = vcombine.low %v555_v5, %v559_v6 }
 0x1f0   :  { %1375 = vmatpush1.bf16.msra.mxu0 %v1574_v11  ;;  %1416 = vmatpush1.bf16.msra.mxu1 %v1576_v12  ;;  %v546_v11 = vld [vmem:[#allocation7 + $0x250] sm:$0xff] }
 0x1f1   :  { %1376 = vmatprep.subr.bf16.mxu0 %v1567_v13  ;;  %1417 = vmatprep.subr.bf16.mxu1 %v1569_v14  ;;  %v550_v12 = vld [vmem:[#allocation7 + $0x270] sm:$0xff]  ;;  %v547_v13 = vld [vmem:[#allocation7 + $0x258] sm:$0xff] }
 0x1f2   :  { %v551_v14 = vld [vmem:[#allocation7 + $0x278] sm:$0xff]  ;;  %v1631_v17 = vcombine.high %v546_v11, %v550_v12  ;;  %v1630_v20 = vcombine.low %v546_v11, %v550_v12 }
 0x1f3   :  { %v1633_v18 = vcombine.high %v547_v13, %v551_v14  ;;  %v1632_v21 = vcombine.low %v547_v13, %v551_v14 }
 0x1f4   :  { %1377 = vmatpush1.bf16.msra.mxu0 %v1566_v52  ;;  %1418 = vmatpush1.bf16.msra.mxu1 %v1568_v55  ;;  %v538_v52 = vld [vmem:[#allocation7 + $0x210] sm:$0xff] }
 0x1f5   :  { %1378 = vmatprep.subr.bf16.mxu0 %v1559_v58  ;;  %1419 = vmatprep.subr.bf16.mxu1 %v1561_v19  ;;  %v542_v55 = vld [vmem:[#allocation7 + $0x230] sm:$0xff]  ;;  %v539_v58 = vld [vmem:[#allocation7 + $0x218] sm:$0xff] }
 0x1f6   :  { %v543_v19 = vld [vmem:[#allocation7 + $0x238] sm:$0xff]  ;;  %v1623_v22 = vcombine.high %v538_v52, %v542_v55 }
 0x1f7   :  { %v1625_v23 = vcombine.high %v539_v58, %v543_v19 }
 0x1f8   :  { %1379 = vmatpush1.bf16.msra.mxu0 %v1558_v24  ;;  %1420 = vmatpush1.bf16.msra.mxu1 %v1560_v25  ;;  %v1622_v24 = vcombine.low %v538_v52, %v542_v55  ;;  %v1624_v25 = vcombine.low %v539_v58, %v543_v19 }
 0x1f9   :  { %1380 = vmatprep.subr.bf16.mxu0 %v1679_v26  ;;  %1421 = vmatprep.subr.bf16.mxu1 %v1681_v27  ;;  %v612_v26 = vsub.s32 2, %v1942_v47  ;;  %v600_v27 = vld [vmem:[%s1989_s6] sm:$0xff]  ;;  %s1881_s6 = smov [#allocation8]  }
 0x1fa   :  { %v605_v29 = vrot.slane %v600_v27, %v1945_v48  ;;  %v609_v32 = vrot.slane %v600_v27, %v1951_v50  ;;  %s1496_s22 = sshll.u32 %s1881_s6, 4  ;;  %s1497_s22 = int_to_ptr.vmem [resolvable:$true] %s1496_s22 }
 0x1fb   :  { %v613_v31 = vrot.slane %v600_v27, %v612_v26  ;;  %s1847_s23 = scalar_lea.vmem %s1497_s22, 512  ;;  %p1852_p2 = scmp.lt.s32.totalorder %s1497_s22, %s1497_s22 }
 0x1fc   :  { %1381 = vmatpush2.bf16.msra.mxu0 %v1678_v33  ;;  %1422 = vmatpush2.bf16.msra.mxu1 %v1680_v34  ;;  %v617_v33 = vrot.slane %v600_v27, %v616_v28  ;;  %p1848_p1 = scmp.ne.s32.totalorder %s1497_s22, %s1847_s23  ;;  %p1853_p3 = scmp.lt.s32.totalorder %s1847_s23, %s1847_s23 }
 0x1fd   :  { %1382 = vmatprep.subr.bf16.mxu0 %v1671_v35  ;;  %1423 = vmatprep.subr.bf16.mxu1 %v1673_v36 }
 0x1fe   :  { %p1854_p4 = por %p1853_p3, %p1852_p2 }
 0x200   :  { %1383 = vmatpush2.bf16.msra.mxu0 %v1670_v41  ;;  %1424 = vmatpush2.bf16.msra.mxu1 %v1672_v42  ;;  %p1855_p5 = pnand %p1854_p4, %p1848_p1 }
 0x201   :  { %1384 = vmatprep.subr.bf16.mxu0 %v1663_v43  ;;  %1425 = vmatprep.subr.bf16.mxu1 %v1665_v44 }
 0x204   :  { %1385 = vmatpush2.bf16.msra.mxu0 %v1662_v53  ;;  %1426 = vmatpush2.bf16.msra.mxu1 %v1664_v54  ;;  %v620_v53 = vsub.s32 4, %v1942_v47  ;;  %v628_v54 = vsub.s32 6, %v1942_v47 }
 0x205   :  { %1386 = vmatprep.subr.bf16.mxu0 %v1655_v56  ;;  %1427 = vmatprep.subr.bf16.mxu1 %v1657_v57  ;;  %v624_v56 = vsub.s32 5, %v1942_v47  ;;  %v632_v57 = vsub.s32 7, %v1942_v47 }
 0x206   :  { %v621_v59 = vrot.slane %v600_v27, %v620_v53  ;;  %v629_v60 = vrot.slane %v600_v27, %v628_v54 }
 0x207   :  { %v625_v61 = vrot.slane %v600_v27, %v624_v56  ;;  %v633_v62 = vrot.slane %v600_v27, %v632_v57 }
 0x208   :  { %1387 = vmatpush2.bf16.msra.mxu0 %v1654_v63  ;;  %1428 = vmatpush2.bf16.msra.mxu1 %v1656_v0 }
 0x209   :  { %1388 = vmatprep.subr.bf16.mxu0 %v1647_v1  ;;  %1429 = vmatprep.subr.bf16.mxu1 %v1649_v2 }
 0x20c   :  { %1389 = vmatpush2.bf16.msra.mxu0 %v1646_v7  ;;  %1430 = vmatpush2.bf16.msra.mxu1 %v1648_v8 }
 0x20d   :  { %1390 = vmatprep.subr.bf16.mxu0 %v1639_v9  ;;  %1431 = vmatprep.subr.bf16.mxu1 %v1641_v10 }
 0x210   :  { %1391 = vmatpush2.bf16.msra.mxu0 %v1638_v15  ;;  %1432 = vmatpush2.bf16.msra.mxu1 %v1640_v16 }
 0x211   :  { %1392 = vmatprep.subr.bf16.mxu0 %v1631_v17  ;;  %1433 = vmatprep.subr.bf16.mxu1 %v1633_v18 }
 0x214   :  { %1393 = vmatpush2.bf16.msra.mxu0 %v1630_v20  ;;  %1434 = vmatpush2.bf16.msra.mxu1 %v1632_v21 }
 0x215   :  { %1394 = vmatprep.subr.bf16.mxu0 %v1623_v22  ;;  %1435 = vmatprep.subr.bf16.mxu1 %v1625_v23 }
 0x218   :  { %1395 = vmatpush2.bf16.msra.mxu0 %v1622_v24  ;;  %1436 = vmatpush2.bf16.msra.mxu1 %v1624_v25 }
 0x21b   :  { %1397 = vmatmul.mubr.bf16.vlgmr.msra.gmra.mxu0 %v1963_v30  ;;  %1438 = vmatmul.mubr.bf16.vlgmr.msra.gmra.mxu1 %v1963_v30 }
 0x29b   :  { %v1316_v34 = vpop.f32.mrf.mxu0  ;;  %v1357_v35 = vpop.f32.mrf.mxu1 }
 0x29c   :  { %v1317_v36 = vadd.f32 %v1316_v34, %v605_v29  ;;  %v1358_v37 = vadd.f32 %v1357_v35, %v613_v31 }
 0x29d   :  { %v1318_v38 = vpop.f32.mrf.mxu0  ;;  %v1359_v30 = vpop.f32.mrf.mxu1 }
 0x29e   :  { %1771 = vtanh.f32 %v1317_v36  ;;  %v1319_v39 = vadd.f32 %v1318_v38, %v609_v32  ;;  %v1360_v40 = vadd.f32 %v1359_v30, %v617_v33 }
 0x29f   :  { %1773 = vtanh.f32 %v1358_v37  ;;  %v1320_v41 = vpop.f32.mrf.mxu0  ;;  %v1361_v42 = vpop.f32.mrf.mxu1 }
 0x2a0   :  { %1775 = vtanh.f32 %v1319_v39 }
 0x2a1   :  { %1777 = vtanh.f32 %v1360_v40  ;;  %v1321_v43 = vpop.f32.mrf.mxu0  ;;  %v1362_v48 = vpop.f32.mrf.mxu1 }
 0x2ab   :  { %v1772_v44 = vpop.eup %1771 }
 0x2ac   :  { %v1774_v45 = vpop.eup %1773 }
 0x2ad   :  { %v1776_v50 = vpop.eup %1775 }
 0x2ae   :  { %v1778_v46 = vpop.eup %1777  ;;  %v1686_v49 = vpack.c.bf16 %v1776_v50, %v1772_v44 }
 0x2af   :  { %v1687_v51 = vpack.c.bf16 %v1778_v46, %v1774_v45 }
 0x2b0   :  { %1486 = vst [vmem:[#allocation8] sm:$0xff] %v1686_v49 }
 0x2b1   :  { %1487 = vst [vmem:[#allocation8 + $0x8] sm:$0xff] %v1687_v51 }
 0x2db   :  { %v1398_v63 = vpop.f32.mrf.mxu0  ;;  %v1439_v0 = vpop.f32.mrf.mxu1 }
 0x2dc   :  { %v1399_v1 = vadd.f32 %v1398_v63, %v621_v59  ;;  %v1440_v2 = vadd.f32 %v1439_v0, %v629_v60 }
 0x2dd   :  { %v1400_v3 = vpop.f32.mrf.mxu0  ;;  %v1441_v4 = vpop.f32.mrf.mxu1 }
 0x2de   :  { %1779 = vtanh.f32 %v1399_v1  ;;  %v1401_v5 = vadd.f32 %v1400_v3, %v625_v61  ;;  %v1442_v6 = vadd.f32 %v1441_v4, %v633_v62 }
 0x2df   :  { %1781 = vtanh.f32 %v1440_v2  ;;  %v1402_v7 = vpop.f32.mrf.mxu0  ;;  %v1443_v8 = vpop.f32.mrf.mxu1 }
 0x2e0   :  { %1783 = vtanh.f32 %v1401_v5 }
 0x2e1   :  { %1785 = vtanh.f32 %v1442_v6  ;;  %v1403_v9 = vpop.f32.mrf.mxu0  ;;  %v1444_v47 = vpop.f32.mrf.mxu1 }
 0x2eb   :  { %v1780_v10 = vpop.eup %1779 }
 0x2ec   :  { %v1782_v11 = vpop.eup %1781 }
 0x2ed   :  { %v1784_v12 = vpop.eup %1783 }
 0x2ee   :  { %v1786_v13 = vpop.eup %1785  ;;  %v1688_v14 = vpack.c.bf16 %v1784_v12, %v1780_v10 }
 0x2ef   :  { %v1689_v15 = vpack.c.bf16 %v1786_v13, %v1782_v11 }
 0x2f0   :  { %1488 = vst [vmem:[#allocation8 + $0x10] sm:$0xff] %v1688_v14 }
 0x2f1   :  { %1489 = vst [vmem:[#allocation8 + $0x18] sm:$0xff] %v1689_v15 }
 0x2f2   :  { %1858 = shalt.err (!%p1855_p5)
}
 0x2f3   :  { %1499 = dma.vmem_to_hbm [thread:$0]  %s1497_s22, 512, %s1990_s7, [#allocation4]  }
 0x2f4   :  { %1871 = dma.done.wait [#allocation4], 512  }
 0x2f5   :  { %1872 = vsyncadd [#allocation4], 4294966784 }
 0x2f6   :  { %1503 = vsyncpa [#allocation3], 1 }
 0x2f7   :  { %1504 = vsyncpa [#allocation6], 1 }
 0x2f8   :  { %1505 = vsyncpa [#allocation4], 1 }

</bundles_post_ra>
